<compile_context>
chip_gen: v5e
topology: v5e:2x2
jax: 0.10.0
libtpu: 0.0.40
codegen_flags: <defaults>
</compile_context>

<pallas_src>
import functools

import jax
import jax.numpy as jnp
from jax import lax
from jax.experimental import pallas as pl
from jax.experimental.pallas import tpu as pltpu


def _round_up(x, m):
    return (x + m - 1) // m * m


def _preferred_oc_tile():
    # v5e's MXU is 128x128 -> 128-wide OC tiles; v6e/v7x have 256-wide MXUs.
    try:
        kind = jax.devices()[0].device_kind.lower()
    except Exception:
        return 256
    return 128 if "v5" in kind else 256


# ---------------------------------------------------------------------------
# 1/sigma: one power-iteration step on W.view(OC, -1), in plain JAX.
# A dedicated pallas_call only added a serialized launch + a second full DMA
# of W for a few MFLOPs of matvec work; XLA fuses these reductions fine.
# ---------------------------------------------------------------------------
def spectral_inv_sigma(weight, u, eps=1e-12):
    oc = weight.shape[0]
    w_mat = weight.reshape(oc, -1).astype(jnp.float32)
    u = u.astype(jnp.float32)
    v = w_mat.T @ u
    v = v / (jnp.linalg.norm(v) + eps)
    wv = w_mat @ v
    u_new = wv / (jnp.linalg.norm(wv) + eps)
    sigma = jnp.dot(u_new, wv)
    # TODO(synk): PyTorch also writes u_new / v back into the module buffers
    # (stateful power-iteration update); only the forward value is reproduced.
    return (1.0 / sigma).reshape(1, 1)


# ---------------------------------------------------------------------------
# Conv kernel: T tap matmuls over contiguous flat row-offset slices,
# value accumulation (no VMEM RMW), fused 1/sigma + bias epilogue.
# ---------------------------------------------------------------------------
def _conv_kernel(x_ref, w_ref, b_ref, inv_sigma_ref, out_ref, *,
                 row_offsets, rows_out):
    # x_ref        : (1, 1, rows_in, Kc)   flattened (rows, channels) slab
    # w_ref        : (T, Kc, OCt)          per-tap (Kc, OC-tile) matmul operands
    # b_ref        : (1, OCt)              f32 bias tile
    # inv_sigma_ref: (1, 1) SMEM f32
    # out_ref      : (1, 1, rows_out, OCt)
    acc = None
    for t, off in enumerate(row_offsets):          # static python loop over taps
        xs = x_ref[0, 0, pl.ds(off, rows_out), :]  # contiguous row-offset slice
        part = jnp.dot(xs, w_ref[t], preferred_element_type=jnp.float32)
        acc = part if acc is None else acc + part
    # f32 epilogue: scale once by 1/sigma, add (unscaled) bias, single store.
    out_ref[0, 0] = (acc * inv_sigma_ref[0, 0] + b_ref[...]).astype(out_ref.dtype)


# ---------------------------------------------------------------------------
# Wrapper
# ---------------------------------------------------------------------------
def spectral_norm_conv_forward(x, weight, bias, u, *,
                               compute_dtype=jnp.float32,
                               out_dtype=None,
                               out_layout="NCHW",
                               fuse_taps=None,
                               vmem_budget_bytes=24 << 20):
    """Forward of SpectralNorm(Conv2d(kernel=3, stride=1, pad=k//2)). x: NCHW.

    On v5e, passing compute_dtype=jnp.bfloat16 halves image DMA bytes (f32 MXU
    accumulation and f32 epilogue are kept).
    """
    n, c, h, w = x.shape
    oc, c_w, kh, kw = weight.shape
    assert c_w == c
    pad_h, pad_w = kh // 2, kw // 2
    out_dtype = x.dtype if out_dtype is None else out_dtype

    inv_sigma = spectral_inv_sigma(weight, u)                     # (1, 1) f32

    isz = jnp.dtype(compute_dtype).itemsize
    osz = jnp.dtype(out_dtype).itemsize
    sublane = max(8, 32 // isz)          # 8 (f32), 16 (bf16), 32 (int8/fp8)
    c_p = _round_up(c, sublane)
    oc_p = _round_up(oc, 128)
    wp = w + 2 * pad_w

    if fuse_taps is None:
        fuse_taps = c_p <= 64            # small-C: deepen MXU contraction depth
    if fuse_taps:
        n_taps, k_c = kh, kw * c_p
    else:
        n_taps, k_c = kh * kw, c_p

    # ---- OC tiling / resident-weight decision -------------------------------
    w_bytes = 2 * n_taps * k_c * oc_p * isz        # double-buffered, conservative
    if w_bytes <= (12 << 20):
        oc_tile = oc_p                             # full weight resident in VMEM
        w_index = lambda i, t, j: (0, 0, 0)
        b_index = lambda i, t, j: (0, 0)
    else:
        oc_tile = min(_preferred_oc_tile(), oc_p)
        oc_p = _round_up(oc_p, oc_tile)
        w_bytes = 2 * n_taps * k_c * oc_tile * isz
        w_index = lambda i, t, j: (0, 0, j)
        b_index = lambda i, t, j: (0, j)
    n_oc = oc_p // oc_tile

    # ---- H tiling: shrink the real block footprint (v7x: 64 MiB / TC) -------
    extra_rows = 0 if fuse_taps else (kw - 1)

    def _block_bytes(th_):
        rows_in_ = (th_ + kh - 1) * wp + extra_rows
        return 2 * rows_in_ * k_c * isz + 2 * th_ * wp * oc_tile * osz

    block_budget = max(vmem_budget_bytes - w_bytes, 1 << 16)
    th = h
    while th > 1 and _block_bytes(th) > block_budget:
        th = -(-th // 2)
    n_h = -(-h // th)
    rows_in = (th + kh - 1) * wp + extra_rows
    rows_out = th * wp
    h_pad_tot = n_h * th                 # pad rows so H tiles divide evenly

    # ---- layout plumbing (plain JAX) -----------------------------------------
    x_nhwc = jnp.transpose(x, (0, 2, 3, 1))
    x_pad = jnp.pad(
        x_nhwc,
        ((0, 0),
         (pad_h, pad_h + (h_pad_tot - h)),
         (pad_w, pad_w + (kw - 1 if fuse_taps else 0)),
         (0, c_p - c)))

    wt = jnp.transpose(weight, (2, 3, 1, 0))                 # (KH, KW, C, OC)
    wt = jnp.pad(wt, ((0, 0), (0, 0), (0, c_p - c), (0, oc_p - oc)))

    if fuse_taps:
        # fold KW taps into the contraction dim: each flat row carries the KW
        # neighbouring input columns -> K = KW*c_p per matmul, KH matmuls.
        x_f = jnp.concatenate(
            [x_pad[:, :, dw:dw + wp, :] for dw in range(kw)], axis=-1)
        w_taps = wt.reshape(kh, kw * c_p, oc_p)
        row_offsets = tuple(dh * wp for dh in range(kh))
    else:
        x_f = x_pad
        w_taps = wt.reshape(kh * kw, c_p, oc_p)
        row_offsets = tuple(dh * wp + dw for dh in range(kh) for dw in range(kw))

    # Per-H-tile slabs with a (KH-1)-row halo, flattened to contiguous (rows, K).
    if n_h == 1:
        x_tiles = x_f.reshape(n, 1, (th + kh - 1) * wp, k_c)
    else:
        x_tiles = jnp.stack(
            [x_f[:, t * th:t * th + th + kh - 1] for t in range(n_h)], axis=1)
        x_tiles = x_tiles.reshape(n, n_h, (th + kh - 1) * wp, k_c)
    if extra_rows:
        x_tiles = jnp.pad(x_tiles, ((0, 0), (0, 0), (0, extra_rows), (0, 0)))
    x_tiles = x_tiles.astype(compute_dtype)
    w_taps = w_taps.astype(compute_dtype)
    b_p = jnp.pad(bias.astype(jnp.float32), (0, oc_p - oc)).reshape(1, oc_p)

    need = w_bytes + _block_bytes(th) + 2 * oc_tile * 4 + (2 << 20)
    vmem_limit = int(max(need, 16 << 20))

    kernel = functools.partial(_conv_kernel, row_offsets=row_offsets,
                               rows_out=rows_out)
    out = pl.pallas_call(
        kernel,
        out_shape=jax.ShapeDtypeStruct((n, n_h, rows_out, oc_p), out_dtype),
        grid=(n, n_h, n_oc),
        in_specs=[
            pl.BlockSpec((1, 1, rows_in, k_c), lambda i, t, j: (i, t, 0, 0)),
            pl.BlockSpec((n_taps, k_c, oc_tile), w_index),
            pl.BlockSpec((1, oc_tile), b_index),
            pl.BlockSpec(memory_space=pltpu.MemorySpace.SMEM),
        ],
        out_specs=pl.BlockSpec((1, 1, rows_out, oc_tile),
                               lambda i, t, j: (i, t, 0, j)),
        compiler_params=pltpu.CompilerParams(
            # OC axis "arbitrary": a megacore split (v7x) lands on batch / H
            # tiles, so the padded image is not DMA'd by both TensorCores.
            dimension_semantics=("parallel", "parallel", "arbitrary"),
            vmem_limit_bytes=vmem_limit),
    )(x_tiles, w_taps, b_p, inv_sigma)

    # drop padded-width columns, padded rows/channels; NHWC by default avoids
    # an extra full-tensor transpose pass for NHWC consumers.
    out = out.reshape(n, n_h * th, wp, oc_p)[:, :h, :w, :oc]
    if out_layout == "NHWC":
        return out
    return jnp.transpose(out, (0, 3, 1, 2))                  # PyTorch parity


# ---------------------------------------------------------------------------
# Pure-JAX reference (sanity check)
# ---------------------------------------------------------------------------
def reference_forward(x, weight, bias, u):
    eps = 1e-12
    oc = weight.shape[0]
    w_mat = weight.reshape(oc, -1)
    v = w_mat.T @ u
    v = v / (jnp.linalg.norm(v) + eps)
    wv = w_mat @ v
    u_new = wv / (jnp.linalg.norm(wv) + eps)
    sigma = jnp.dot(u_new, wv)
    w_sn = weight / sigma
    y = lax.conv_general_dilated(
        x, w_sn, window_strides=(1, 1), padding=((1, 1), (1, 1)),
        dimension_numbers=("NCHW", "OIHW", "NCHW"))
    return y + bias.reshape(1, oc, 1, 1)


if __name__ == "__main__":
    key = jax.random.PRNGKey(0)
    k_x, k_w, k_b, k_u = jax.random.split(key, 4)

    N, C_in, H, W = 2, 4, 16, 16
    C_out, KH, KW = 8, 3, 3

    x = jax.random.normal(k_x, (N, C_in, H, W), jnp.float32)
    weight = jax.random.normal(k_w, (C_out, C_in, KH, KW), jnp.float32) * 0.1
    bias = jax.random.normal(k_b, (C_out,), jnp.float32) * 0.1
    u = jax.random.normal(k_u, (C_out,), jnp.float32)
    u = u / (jnp.linalg.norm(u) + 1e-12)     # as in SpectralNorm._make_params

    y_ref = reference_forward(x, weight, bias, u)

    # f32, tap-fused contraction path (C is small), one image per block.
    y32 = jax.block_until_ready(spectral_norm_conv_forward(x, weight, bias, u))
    assert y32.shape == (N, C_out, H, W)
    assert jnp.allclose(y32, y_ref, atol=1e-4, rtol=1e-4)

    # per-tap (non-fused) path, exercised explicitly (used when C is large).
    y_nf = jax.block_until_ready(
        spectral_norm_conv_forward(x, weight, bias, u, fuse_taps=False))
    assert jnp.allclose(y_nf, y_ref, atol=1e-4, rtol=1e-4)

    # forced H-tiling (tiny VMEM budget -> several row tiles with halo); the
    # path a v7x (64 MiB/TC) deployment relies on for large images.
    y_ht = jax.block_until_ready(
        spectral_norm_conv_forward(x, weight, bias, u,
                                   vmem_budget_bytes=128 << 10))
    assert jnp.allclose(y_ht, y_ref, atol=1e-4, rtol=1e-4)

    # bf16 matmul inputs (f32 MXU accumulation + f32 epilogue), NHWC output.
    y16 = jax.block_until_ready(
        spectral_norm_conv_forward(x, weight, bias, u,
                                   compute_dtype=jnp.bfloat16,
                                   out_layout="NHWC"))
    assert y16.shape == (N, H, W, C_out)
    assert jnp.allclose(y16, jnp.transpose(y_ref, (0, 2, 3, 1)),
                        atol=3e-2, rtol=3e-2)

    print("KERNEL_OK")
</pallas_src>

<mosaic_0001>
module attributes {stable_mosaic.version = 11 : i64} {
  func.func @_conv_kernel(%arg0: i32, %arg1: i32, %arg2: i32, %arg3: memref<1x1x324x24xf32, #tpu.memory_space<vmem>>, %arg4: memref<3x24x128xf32, #tpu.memory_space<vmem>>, %arg5: memref<1x128xf32, #tpu.memory_space<vmem>>, %arg6: memref<1x1xf32, #tpu.memory_space<smem>>, %arg7: memref<1x1x288x128xf32, #tpu.memory_space<vmem>>) attributes {dimension_semantics = [#tpu.dimension_semantics<parallel>, #tpu.dimension_semantics<parallel>, #tpu.dimension_semantics<arbitrary>], iteration_bounds = array<i64: 2, 1, 1>, scalar_prefetch = 0 : i64, scratch_operands = 0 : i64, tpu.core_type = #tpu.core_type<tc>, window_params = [{transform_indices = @transform_0, window_bounds = array<i64: 1, 1, 324, 24>}, {pipeline_mode = #tpu.pipeline_mode<synchronous>, transform_indices = @transform_1, window_bounds = array<i64: 3, 24, 128>}, {pipeline_mode = #tpu.pipeline_mode<synchronous>, transform_indices = @transform_2, window_bounds = array<i64: 1, 128>}, {transform_indices = @transform_3, window_bounds = array<i64: 1, 1>}, {transform_indices = @transform_4, window_bounds = array<i64: 1, 1, 288, 128>}]} {
    %c0 = arith.constant 0 : index
    %c0_0 = arith.constant 0 : index
    %c0_1 = arith.constant 0 : index
    %c0_2 = arith.constant 0 : index
    %0 = vector.load %arg3[%c0, %c0_0, %c0_1, %c0_2] : memref<1x1x324x24xf32, #tpu.memory_space<vmem>>, vector<1x1x288x24xf32>
    %1 = vector.shape_cast %0 : vector<1x1x288x24xf32> to vector<288x24xf32>
    %c0_3 = arith.constant 0 : index
    %c0_4 = arith.constant 0 : index
    %c0_5 = arith.constant 0 : index
    %2 = vector.load %arg4[%c0_3, %c0_4, %c0_5] : memref<3x24x128xf32, #tpu.memory_space<vmem>>, vector<1x24x128xf32>
    %3 = vector.shape_cast %2 : vector<1x24x128xf32> to vector<24x128xf32>
    %cst = arith.constant dense<0.000000e+00> : vector<288x128xf32>
    %4 = tpu.matmul %1, %3, %cst {dimension_numbers = #tpu.dot_dimension_numbers<[1], [0], [0], [1], [0, 0, 1, 1], [], []>} : vector<288x24xf32>, vector<24x128xf32>, vector<288x128xf32> -> vector<288x128xf32>
    %c0_6 = arith.constant 0 : index
    %c0_7 = arith.constant 0 : index
    %c18 = arith.constant 18 : index
    %c0_8 = arith.constant 0 : index
    %5 = vector.load %arg3[%c0_6, %c0_7, %c18, %c0_8] : memref<1x1x324x24xf32, #tpu.memory_space<vmem>>, vector<1x1x288x24xf32>
    %6 = vector.shape_cast %5 : vector<1x1x288x24xf32> to vector<288x24xf32>
    %c1 = arith.constant 1 : index
    %c0_9 = arith.constant 0 : index
    %c0_10 = arith.constant 0 : index
    %7 = vector.load %arg4[%c1, %c0_9, %c0_10] : memref<3x24x128xf32, #tpu.memory_space<vmem>>, vector<1x24x128xf32>
    %8 = vector.shape_cast %7 : vector<1x24x128xf32> to vector<24x128xf32>
    %cst_11 = arith.constant dense<0.000000e+00> : vector<288x128xf32>
    %9 = tpu.matmul %6, %8, %cst_11 {dimension_numbers = #tpu.dot_dimension_numbers<[1], [0], [0], [1], [0, 0, 1, 1], [], []>} : vector<288x24xf32>, vector<24x128xf32>, vector<288x128xf32> -> vector<288x128xf32>
    %10 = arith.addf %4, %9 : vector<288x128xf32>
    %c0_12 = arith.constant 0 : index
    %c0_13 = arith.constant 0 : index
    %c36 = arith.constant 36 : index
    %c0_14 = arith.constant 0 : index
    %11 = vector.load %arg3[%c0_12, %c0_13, %c36, %c0_14] : memref<1x1x324x24xf32, #tpu.memory_space<vmem>>, vector<1x1x288x24xf32>
    %12 = vector.shape_cast %11 : vector<1x1x288x24xf32> to vector<288x24xf32>
    %c2 = arith.constant 2 : index
    %c0_15 = arith.constant 0 : index
    %c0_16 = arith.constant 0 : index
    %13 = vector.load %arg4[%c2, %c0_15, %c0_16] : memref<3x24x128xf32, #tpu.memory_space<vmem>>, vector<1x24x128xf32>
    %14 = vector.shape_cast %13 : vector<1x24x128xf32> to vector<24x128xf32>
    %cst_17 = arith.constant dense<0.000000e+00> : vector<288x128xf32>
    %15 = tpu.matmul %12, %14, %cst_17 {dimension_numbers = #tpu.dot_dimension_numbers<[1], [0], [0], [1], [0, 0, 1, 1], [], []>} : vector<288x24xf32>, vector<24x128xf32>, vector<288x128xf32> -> vector<288x128xf32>
    %16 = arith.addf %10, %15 : vector<288x128xf32>
    %c0_18 = arith.constant 0 : index
    %c0_19 = arith.constant 0 : index
    %17 = memref.load %arg6[%c0_18, %c0_19] : memref<1x1xf32, #tpu.memory_space<smem>>
    %18 = vector.broadcast %17 : f32 to vector<288x128xf32>
    %19 = arith.mulf %16, %18 : vector<288x128xf32>
    %c0_20 = arith.constant 0 : index
    %c0_21 = arith.constant 0 : index
    %20 = vector.load %arg5[%c0_20, %c0_21] : memref<1x128xf32, #tpu.memory_space<vmem>>, vector<1x128xf32>
    %21 = vector.broadcast %20 : vector<1x128xf32> to vector<288x128xf32>
    %22 = arith.addf %19, %21 : vector<288x128xf32>
    %c0_22 = arith.constant 0 : index
    %c0_23 = arith.constant 0 : index
    %c0_24 = arith.constant 0 : index
    %c0_25 = arith.constant 0 : index
    %23 = vector.load %arg7[%c0_22, %c0_23, %c0_24, %c0_25] : memref<1x1x288x128xf32, #tpu.memory_space<vmem>>, vector<1x1x288x128xf32>
    %24 = vector.shape_cast %23 : vector<1x1x288x128xf32> to vector<288x128xf32>
    %25 = vector.shape_cast %22 : vector<288x128xf32> to vector<1x1x288x128xf32>
    tpu.vector_store %arg7[%c0_22, %c0_23, %c0_24, %c0_25], %25 {strides = array<i32>} : memref<1x1x288x128xf32, #tpu.memory_space<vmem>>, vector<1x1x288x128xf32>,
    return
  }
  func.func @transform_0(%arg0: i32, %arg1: i32, %arg2: i32) -> (i32, i32, i32, i32) {
    %c0_i32 = arith.constant 0 : i32
    %c0_i32_0 = arith.constant 0 : i32
    %c0_i32_1 = arith.constant 0 : i32
    return %arg0, %arg1, %c0_i32, %c0_i32_0 : i32, i32, i32, i32
  }
  func.func @transform_1(%arg0: i32, %arg1: i32, %arg2: i32) -> (i32, i32, i32) {
    %c0_i32 = arith.constant 0 : i32
    %c0_i32_0 = arith.constant 0 : i32
    %c0_i32_1 = arith.constant 0 : i32
    %c0_i32_2 = arith.constant 0 : i32
    return %c0_i32, %c0_i32_0, %c0_i32_1 : i32, i32, i32
  }
  func.func @transform_2(%arg0: i32, %arg1: i32, %arg2: i32) -> (i32, i32) {
    %c0_i32 = arith.constant 0 : i32
    %c0_i32_0 = arith.constant 0 : i32
    %c0_i32_1 = arith.constant 0 : i32
    return %c0_i32, %c0_i32_0 : i32, i32
  }
  func.func @transform_3(%arg0: i32, %arg1: i32, %arg2: i32) -> (i32, i32) {
    %c0_i32 = arith.constant 0 : i32
    %c0_i32_0 = arith.constant 0 : i32
    %c0_i32_1 = arith.constant 0 : i32
    return %c0_i32, %c0_i32_0 : i32, i32
  }
  func.func @transform_4(%arg0: i32, %arg1: i32, %arg2: i32) -> (i32, i32, i32, i32) {
    %c0_i32 = arith.constant 0 : i32
    %c0_i32_0 = arith.constant 0 : i32
    return %arg0, %arg1, %c0_i32, %arg2 : i32, i32, i32, i32
  }
}

</mosaic_0001>

<bundles_post_ra>
// kernel: tpu_custom_call.1
= control target key start
LH: loop header
LB: loop body
LE: loop exit
PB: predicated region body
PF: predicated region fallthrough
CT: control target
= control target key end

     0   :  { %s2129_s0 = inlined_call_operand.vmem [shape: f32[2,1,324,24], index: 0, kind: input, shape index: {}]   ;;  %s2130_s1 = inlined_call_operand.vmem [shape: f32[3,24,128], index: 1, kind: input, shape index: {}]   ;;  %s2131_s2 = inlined_call_operand.vmem [shape: f32[1,128], index: 2, kind: input, shape index: {}]   ;;  %s2132_s3 = inlined_call_operand.<no memory space> [shape: f32[1,1], index: 3, kind: input, shape index: {}]   ;;  %s2133_s4 = inlined_call_operand.hbm [shape: f32[2,1,288,128], index: 4, kind: output, shape index: {}]  }
   0x1   :  { %9 = sst [smem:[#allocation2]] %s2132_s3 }
   0x2   :  { %10 = vsyncpa [#allocation4], 0 }
   0x3   :  { %12 = vsyncpa [#allocation4 + $0x1], 0  ;;  %s1611_s17 = smov 0   ;;  %s1613_s18 = smov 0  }
   0x4   :  { %s1615_s19 = smov 0   ;;  %s1617_s20 = smov 0  }
   0x5   :  { %s1619_s21 = smov 0   ;;  %s1621_s22 = smov 0  }
   0x6 LB: > { %s1308_s3 = sadd.s32 4294967295, %s1579_s22   ;;  %s1309_s23 = sadd.s32 4294967294, %s1579_s22   ;;  %s1579_s22 = sphi %s1621_s22, %s18_s22   ;;  %s1575_s21 = sphi %s1619_s21, %s2140_s21   ;;  %s1571_s20 = sphi %s1617_s20, %s2139_s20   ;;  %s1567_s19 = sphi %s1615_s19, %s2138_s19   ;;  %s1563_s18 = sphi %s1613_s18, %s2137_s18   ;;  %s1559_s17 = sphi %s1611_s17, %s2136_s17  }
   0x7   : > { %s37_s24 = sadd.s32 1, %s1575_s21  ;;  %s139_s25 = sadd.s32 1, %s1567_s19 }
   0x8   : > { %p39_p0 = scmp.ge.s32.totalorder %s37_s24, 2  ;;  %p149_p1 = scmp.ne.s32.totalorder %s1567_s19, %s1563_s18 }
   0x9   : > { %p150_p2 = scmp.eq.s32.totalorder %s1308_s3, 1  ;;  %p155_p3 = scmp.ne.s32.totalorder %s1563_s18, %s1559_s17 }
   0xa   : > { %s2142_s24 = smov (%p39_p0, %s37_s24), 0  ;;  %p156_p5 = scmp.eq.s32.totalorder %s1309_s23, 1 }
   0xb   : > { %p1651_p4 = por %p150_p2, %p149_p1  ;;  %s132_s27 = ssub.s32 %s1575_s21, %s2142_s24 }
   0xc   : > { %p1312_p6 = scmp.ge.s32.totalorder %s1579_s22, 1  ;;  %p137_p7 = scmp.eq.s32.totalorder %s132_s27, 0 }
   0xd   : > { %p1658_p8 = por %p156_p5, %p155_p3  ;;  %p195_p9 = scmp.lt.s32.totalorder %s1579_s22, 3 }
   0xe   : > { %s1664_s29 = scalar_select %p137_p7, %s1567_s19, %s139_s25  }
   0xf   : > { %p196_p10 = pnand %p1312_p6, %p195_p9 }
  0x10   : > { %p225_p11 = scmp.lt.s32.totalorder (!%p196_p10), %s1571_s20, 1  ;;  %s1089_s10 = sld [smem:[#allocation2]] (!%p196_p10) }
  0x11   : > { %199 = sbr.rel (%p196_p10) target bundleno = 380 (0x17c), region = 36  ;;  %s222_s11 = sand.u32 (!%p196_p10), 1, %s1563_s18  }
  0x12   : > { %s1440_s12 = smul.u32 (!%p196_p10), 288, %s222_s11 }
  0x13   : > { %s1442_s16 = smul.u32 (!%p196_p10), 288, %s1571_s20 }
  0x14   : > { %s1858_s15 = scalar_lea.vmem (!%p196_p10), [#allocation3], %s1440_s12 }
  0x15   : > { %s1218_s25 = scalar_lea.hbm (!%p196_p10), %s2133_s4, %s1442_s16 }
  0x16   : > { %v1316_v0 = vld [vmem:[%s2130_s1 + $0x28] sm:$0xff]  ;;  %v1391_v1 = vld [vmem:[%s2130_s1 + $0x40] sm:$0xff]  ;;  %v1390_v3 = vld [vmem:[%s2130_s1 + $0x38] sm:$0xff]  ;;  %s226_s23 = scalar_select %p225_p11, %s1571_s20, 1  ;;  %vm313_vm0 = vcmask 195584  }
  0x17   : > { %v1315_v2 = vld [vmem:[%s2130_s1 + $0x20] sm:$0xff]  ;;  %1431 = vmatpush.msra.mxu3 %v1316_v0  ;;  %941 = vmatpush.msra.mxu2 %v1391_v1  ;;  %v272_v4 = vld [vmem:[%s2130_s1 + $0x10] sm:$0xff]  ;;  %v1314_v5 = vld [vmem:[%s2130_s1 + $0x18] sm:$0xff]  ;;  %s1219_s20 = sshll.u32 %s1858_s15, 4  ;;  %s1221_s27 = sshll.u32 %s1218_s25, 4  ;;  %s1220_s20 = int_to_ptr.vmem [resolvable:$true] %s1219_s20  ;;  %s1222_s27 = int_to_ptr.hbm [resolvable:$true] %s1221_s27 }
  0x18   : > { %435 = vmatpush.msra.mxu0 %v1316_v0  ;;  %668 = vmatpush.msra.mxu1 %v272_v4  ;;  %v1389_v6 = vld [vmem:[%s2130_s1 + $0x30] sm:$0xff]  ;;  %v271_v7 = vld [vmem:[%s2130_s1 + $0x8] sm:$0xff]  ;;  %s1441_s30 = smul.u32 328, %s226_s23  ;;  %v270_v8 = vld [vmem:[%s2130_s1] sm:$0xff]  ;;  %s1515_s5 = sshra.s32 %s1222_s27, 4  ;;  %s1516_s5 = int_to_ptr.hbm [resolvable:$true] %s1515_s5 }
  0x19   : > { %1432 = vmatpush.msra.mxu3 %v1315_v2  ;;  %942 = vmatpush.msra.mxu2 %v1390_v3  ;;  %s1517_s6 = scalar_lea.hbm %s1516_s5, 288  ;;  %p1522_p1 = scmp.lt.s32.totalorder %s1516_s5, %s2133_s4 }
  0x1a   : > { %436 = vmatpush.msra.mxu0 %v1315_v2  ;;  %669 = vmatpush.msra.mxu1 %v271_v7  ;;  %s1698_s9 = scalar_lea.vmem %s2129_s0, %s1441_s30  ;;  %s1204_s30 = scalar_lea.sflag [#allocation4], %s222_s11 }
  0x1b   : > { %1433 = vmatpush.msra.mxu3 %v1314_v5  ;;  %943 = vmatpush.msra.mxu2 %v1389_v6  ;;  %v300_v9 = vld [vmem:[%s1698_s9 + $0xea] sm:$0xff]  ;;  %v273_v11 = vld [vmem:[%s1698_s9 + $0x12] sm:$0xff]  ;;  %v234_v12 = vld [vmem:[%s1698_s9] sm:$0xff]  ;;  %p1518_p12 = scmp.ne.s32.totalorder %s1516_s5, %s1517_s6 }
  0x1c   : > { %437 = vmatpush.msra.mxu0 %v1314_v5  ;;  %v780_v10 = vld [vmem:[%s1698_s9 + $0x24] sm:$0xff]  ;;  %670 = vmatpush.msra.mxu1 %v270_v8  ;;  %v301_v13 = vld [vmem:[%s1698_s9 + $0xf2] sm:$0xff]  ;;  %v274_v15 = vld [vmem:[%s1698_s9 + $0x1a] sm:$0xff] }
  0x1d   : > { %1434 = vmatpush.msrb.mxu3 %v272_v4  ;;  %1392 = vmatmul.msk.f32.vlgmr.msra.gmra.mxu2 %vm313_vm0, %v780_v10  ;;  %v781_v14 = vld [vmem:[%s1698_s9 + $0x2c] sm:$0xff]  ;;  %v302_v17 = vld [vmem:[%s1698_s9 + $0xfa] sm:$0xff]  ;;  %v275_v19 = vld [vmem:[%s1698_s9 + $0x22] sm:$0xff]  ;;  %p1519_p13 = pnand %p1518_p12, %p1651_p4 }
  0x1e   : > { %1344 = vmatmul.msk.f32.vlgmr.msra.gmra.mxu3 %vm313_vm0, %v300_v9  ;;  %1317 = vmatmul.msk.f32.vlgmr.msra.gmra.mxu0 %vm313_vm0, %v273_v11  ;;  %v235_v16 = vld [vmem:[%s1698_s9 + $0x8] sm:$0xff]  ;;  %v782_v18 = vld [vmem:[%s1698_s9 + $0x34] sm:$0xff]  ;;  %v783_v22 = vld [vmem:[%s1698_s9 + $0x3c] sm:$0xff] }
  0x1f   : > { %1353 = vmatmul.msk.f32.vlgmr.msra.gmra.mxu1 %vm313_vm0, %v234_v12  ;;  %1435 = vmatpush.msrb.mxu3 %v271_v7  ;;  %v236_v20 = vld [vmem:[%s1698_s9 + $0x10] sm:$0xff]  ;;  %v303_v21 = vld [vmem:[%s1698_s9 + $0x102] sm:$0xff]  ;;  %v237_v24 = vld [vmem:[%s1698_s9 + $0x18] sm:$0xff]  ;;  %p1520_p0 = pneg %p1519_p13 }
  0x20   : > { %v276_v23 = vld [vmem:[%s1698_s9 + $0x2a] sm:$0xff]  ;;  %v277_v27 = vld [vmem:[%s1698_s9 + $0x32] sm:$0xff]  ;;  %v238_v28 = vld [vmem:[%s1698_s9 + $0x20] sm:$0xff] }
  0x21   : > { %1436 = vmatpush.msrb.mxu3 %v270_v8  ;;  %v304_v25 = vld [vmem:[%s1698_s9 + $0x10a] sm:$0xff]  ;;  %v305_v29 = vld [vmem:[%s1698_s9 + $0x112] sm:$0xff]  ;;  %v278_v31 = vld [vmem:[%s1698_s9 + $0x3a] sm:$0xff] }
  0x22   : > { %v784_v26 = vld [vmem:[%s1698_s9 + $0x44] sm:$0xff]  ;;  %v785_v30 = vld [vmem:[%s1698_s9 + $0x4c] sm:$0xff]  ;;  %v306_v33 = vld [vmem:[%s1698_s9 + $0x11a] sm:$0xff] }
  0x23   : > { %1437 = vmatpush.msra.mxu3 %v1391_v1  ;;  %v239_v32 = vld [vmem:[%s1698_s9 + $0x28] sm:$0xff]  ;;  %v786_v34 = vld [vmem:[%s1698_s9 + $0x54] sm:$0xff]  ;;  %v787_v38 = vld [vmem:[%s1698_s9 + $0x5c] sm:$0xff] }
  0x24   : > { %v279_v35 = vld [vmem:[%s1698_s9 + $0x42] sm:$0xff]  ;;  %v240_v36 = vld [vmem:[%s1698_s9 + $0x30] sm:$0xff]  ;;  %v241_v40 = vld [vmem:[%s1698_s9 + $0x38] sm:$0xff] }
  0x25   : > { %1438 = vmatpush.msra.mxu3 %v1390_v3  ;;  %1393 = vmatmul.msk.f32.gmra.mxu2 %vm313_vm0, %v781_v14  ;;  %v307_v37 = vld [vmem:[%s1698_s9 + $0x122] sm:$0xff]  ;;  %v280_v39 = vld [vmem:[%s1698_s9 + $0x4a] sm:$0xff]  ;;  %v281_v43 = vld [vmem:[%s1698_s9 + $0x52] sm:$0xff] }
  0x26   : > { %1345 = vmatmul.msk.f32.gmra.mxu3 %vm313_vm0, %v301_v13  ;;  %1318 = vmatmul.msk.f32.gmra.mxu0 %vm313_vm0, %v274_v15  ;;  %v308_v41 = vld [vmem:[%s1698_s9 + $0x12a] sm:$0xff]  ;;  %v242_v44 = vld [vmem:[%s1698_s9 + $0x40] sm:$0xff]  ;;  %v261_v45 = vld [vmem:[%s1698_s9 + $0xd8] sm:$0xff] }
  0x27   : > { %1354 = vmatmul.msk.f32.gmra.mxu1 %vm313_vm0, %v235_v16  ;;  %1439 = vmatpush.msra.mxu3 %v1389_v6  ;;  %v788_v42 = vld [vmem:[%s1698_s9 + $0x64] sm:$0xff]  ;;  %v789_v46 = vld [vmem:[%s1698_s9 + $0x6c] sm:$0xff]  ;;  %v282_v47 = vld [vmem:[%s1698_s9 + $0x5a] sm:$0xff] }
  0x28   : > { %v243_v48 = vld [vmem:[%s1698_s9 + $0x48] sm:$0xff]  ;;  %v262_v49 = vld [vmem:[%s1698_s9 + $0xe0] sm:$0xff]  ;;  %v790_v50 = vld [vmem:[%s1698_s9 + $0x74] sm:$0xff] }
  0x29   : > { %v283_v51 = vld [vmem:[%s1698_s9 + $0x62] sm:$0xff]  ;;  %v244_v52 = vld [vmem:[%s1698_s9 + $0x50] sm:$0xff]  ;;  %v245_v56 = vld [vmem:[%s1698_s9 + $0x58] sm:$0xff] }
  0x2a   : > { %v263_v53 = vld [vmem:[%s1698_s9 + $0xe8] sm:$0xff]  ;;  %v791_v54 = vld [vmem:[%s1698_s9 + $0x7c] sm:$0xff]  ;;  %v264_v57 = vld [vmem:[%s1698_s9 + $0xf0] sm:$0xff] }
  0x2b   : > { %v284_v55 = vld [vmem:[%s1698_s9 + $0x6a] sm:$0xff]  ;;  %v285_v59 = vld [vmem:[%s1698_s9 + $0x72] sm:$0xff]  ;;  %v246_v60 = vld [vmem:[%s1698_s9 + $0x60] sm:$0xff] }
  0x2c   : > { %v792_v58 = vld [vmem:[%s1698_s9 + $0x84] sm:$0xff]  ;;  %v265_v61 = vld [vmem:[%s1698_s9 + $0xf8] sm:$0xff]  ;;  %v793_v62 = vld [vmem:[%s1698_s9 + $0x8c] sm:$0xff] }
  0x2d   : > { %1394 = vmatmul.msk.f32.gmra.mxu2 %vm313_vm0, %v782_v18  ;;  %v286_v63 = vld [vmem:[%s1698_s9 + $0x7a] sm:$0xff]  ;;  %v247_v0 = vld [vmem:[%s1698_s9 + $0x68] sm:$0xff]  ;;  %v248_v4 = vld [vmem:[%s1698_s9 + $0x70] sm:$0xff]  ;;  %v1841_v18 = vstv %s1089_s10 }
  0x2e   : > { %1346 = vmatmul.msk.f32.gmra.mxu3 %vm313_vm0, %v302_v17  ;;  %1319 = vmatmul.msk.f32.gmra.mxu0 %vm313_vm0, %v275_v19  ;;  %v266_v1 = vld [vmem:[%s1698_s9 + $0x100] sm:$0xff]  ;;  %v794_v2 = vld [vmem:[%s1698_s9 + $0x94] sm:$0xff]  ;;  %v267_v5 = vld [vmem:[%s1698_s9 + $0x108] sm:$0xff] }
  0x2f   : > { %1355 = vmatmul.msk.f32.gmra.mxu1 %vm313_vm0, %v236_v20  ;;  %v287_v3 = vld [vmem:[%s1698_s9 + $0x82] sm:$0xff]  ;;  %v288_v7 = vld [vmem:[%s1698_s9 + $0x8a] sm:$0xff]  ;;  %v249_v8 = vld [vmem:[%s1698_s9 + $0x78] sm:$0xff] }
  0x30   : > { %v795_v6 = vld [vmem:[%s1698_s9 + $0x9c] sm:$0xff]  ;;  %v268_v9 = vld [vmem:[%s1698_s9 + $0x110] sm:$0xff]  ;;  %v796_v10 = vld [vmem:[%s1698_s9 + $0xa4] sm:$0xff] }
  0x31   : > { %v289_v13 = vld [vmem:[%s1698_s9 + $0x92] sm:$0xff]  ;;  %v250_v14 = vld [vmem:[%s1698_s9 + $0x80] sm:$0xff] }
  0x32   : > { %v1846_v20 = vld [vmem:[%s2131_s2] ss:$0 sm:$0xff] }
  0x35   : > { %1395 = vmatmul.msk.f32.gmra.mxu2 %vm313_vm0, %v783_v22  ;;  %v797_v22 = vld [vmem:[%s1698_s9 + $0xac] sm:$0xff] }
  0x36   : > { %1347 = vmatmul.msk.f32.gmra.mxu3 %vm313_vm0, %v303_v21  ;;  %1320 = vmatmul.msk.f32.gmra.mxu0 %vm313_vm0, %v276_v23  ;;  %v269_v21 = vld [vmem:[%s1698_s9 + $0x118] sm:$0xff] }
  0x37   : > { %1356 = vmatmul.msk.f32.gmra.mxu1 %vm313_vm0, %v237_v24 }
  0x3d   : > { %1396 = vmatmul.msk.f32.gmra.mxu2 %vm313_vm0, %v784_v26  ;;  %v290_v26 = vld [vmem:[%s1698_s9 + $0x9a] sm:$0xff] }
  0x3e   : > { %1348 = vmatmul.msk.f32.gmra.mxu3 %vm313_vm0, %v304_v25  ;;  %1321 = vmatmul.msk.f32.gmra.mxu0 %vm313_vm0, %v277_v27  ;;  %v251_v27 = vld [vmem:[%s1698_s9 + $0x88] sm:$0xff] }
  0x3f   : > { %1357 = vmatmul.msk.f32.gmra.mxu1 %vm313_vm0, %v238_v28 }
  0x45   : > { %1397 = vmatmul.msk.f32.gmra.mxu2 %vm313_vm0, %v785_v30 }
  0x46   : > { %1349 = vmatmul.msk.f32.gmra.mxu3 %vm313_vm0, %v305_v29  ;;  %1322 = vmatmul.msk.f32.gmra.mxu0 %vm313_vm0, %v278_v31 }
  0x47   : > { %1358 = vmatmul.msk.f32.gmra.mxu1 %vm313_vm0, %v239_v32 }
  0x4d   : > { %1398 = vmatmul.msk.f32.gmra.mxu2 %vm313_vm0, %v786_v34  ;;  %v807_v34 = vld [vmem:[%s1698_s9 + $0xfc] sm:$0xff] }
  0x4e   : > { %1350 = vmatmul.msk.f32.gmra.mxu3 %vm313_vm0, %v306_v33  ;;  %1323 = vmatmul.msk.f32.gmra.mxu0 %vm313_vm0, %v279_v35  ;;  %v798_v33 = vld [vmem:[%s1698_s9 + $0xb4] sm:$0xff] }
  0x4f   : > { %1359 = vmatmul.msk.f32.gmra.mxu1 %vm313_vm0, %v240_v36 }
  0x55   : > { %1399 = vmatmul.msk.f32.gmra.mxu2 %vm313_vm0, %v787_v38  ;;  %v291_v38 = vld [vmem:[%s1698_s9 + $0xa2] sm:$0xff] }
  0x56   : > { %1351 = vmatmul.msk.f32.gmra.mxu3 %vm313_vm0, %v307_v37  ;;  %1324 = vmatmul.msk.f32.gmra.mxu0 %vm313_vm0, %v280_v39  ;;  %v252_v39 = vld [vmem:[%s1698_s9 + $0x90] sm:$0xff] }
  0x57   : > { %1360 = vmatmul.msk.f32.gmra.mxu1 %vm313_vm0, %v241_v40 }
  0x5d   : > { %1400 = vmatmul.msk.f32.gmra.mxu2 %vm313_vm0, %v788_v42 }
  0x5e   : > { %1352 = vmatmul.msk.f32.gmra.mxu3 %vm313_vm0, %v308_v41  ;;  %1325 = vmatmul.msk.f32.gmra.mxu0 %vm313_vm0, %v281_v43 }
  0x5f   : > { %1361 = vmatmul.msk.f32.gmra.mxu1 %vm313_vm0, %v242_v44 }
  0x65   : > { %1401 = vmatmul.msk.f32.gmra.mxu2 %vm313_vm0, %v789_v46  ;;  %v808_v46 = vld [vmem:[%s1698_s9 + $0x104] sm:$0xff] }
  0x66   : > { %1380 = vmatmul.msk.f32.vlgmr.msrb.gmra.mxu3 %vm313_vm0, %v261_v45  ;;  %1326 = vmatmul.msk.f32.gmra.mxu0 %vm313_vm0, %v282_v47  ;;  %v799_v45 = vld [vmem:[%s1698_s9 + $0xbc] sm:$0xff] }
  0x67   : > { %1362 = vmatmul.msk.f32.gmra.mxu1 %vm313_vm0, %v243_v48 }
  0x6d   : > { %1402 = vmatmul.msk.f32.gmra.mxu2 %vm313_vm0, %v790_v50  ;;  %v292_v50 = vld [vmem:[%s1698_s9 + $0xaa] sm:$0xff] }
  0x6e   : > { %1381 = vmatmul.msk.f32.gmra.mxu3 %vm313_vm0, %v262_v49  ;;  %1327 = vmatmul.msk.f32.gmra.mxu0 %vm313_vm0, %v283_v51  ;;  %v253_v51 = vld [vmem:[%s1698_s9 + $0x98] sm:$0xff] }
  0x6f   : > { %1363 = vmatmul.msk.f32.gmra.mxu1 %vm313_vm0, %v244_v52 }
  0x75   : > { %1403 = vmatmul.msk.f32.gmra.mxu2 %vm313_vm0, %v791_v54 }
  0x76   : > { %1382 = vmatmul.msk.f32.gmra.mxu3 %vm313_vm0, %v263_v53  ;;  %1328 = vmatmul.msk.f32.gmra.mxu0 %vm313_vm0, %v284_v55 }
  0x77   : > { %1364 = vmatmul.msk.f32.gmra.mxu1 %vm313_vm0, %v245_v56 }
  0x7d   : > { %1404 = vmatmul.msk.f32.gmra.mxu2 %vm313_vm0, %v792_v58  ;;  %v809_v58 = vld [vmem:[%s1698_s9 + $0x10c] sm:$0xff] }
  0x7e   : > { %1383 = vmatmul.msk.f32.gmra.mxu3 %vm313_vm0, %v264_v57  ;;  %1329 = vmatmul.msk.f32.gmra.mxu0 %vm313_vm0, %v285_v59  ;;  %v800_v57 = vld [vmem:[%s1698_s9 + $0xc4] sm:$0xff] }
  0x7f   : > { %1365 = vmatmul.msk.f32.gmra.mxu1 %vm313_vm0, %v246_v60 }
  0x85   : > { %1405 = vmatmul.msk.f32.gmra.mxu2 %vm313_vm0, %v793_v62  ;;  %v293_v62 = vld [vmem:[%s1698_s9 + $0xb2] sm:$0xff] }
  0x86   : > { %1384 = vmatmul.msk.f32.gmra.mxu3 %vm313_vm0, %v265_v61  ;;  %1330 = vmatmul.msk.f32.gmra.mxu0 %vm313_vm0, %v286_v63  ;;  %v254_v63 = vld [vmem:[%s1698_s9 + $0xa0] sm:$0xff] }
  0x87   : > { %1366 = vmatmul.msk.f32.gmra.mxu1 %vm313_vm0, %v247_v0 }
  0x8d   : > { %1406 = vmatmul.msk.f32.gmra.mxu2 %vm313_vm0, %v794_v2 }
  0x8e   : > { %1385 = vmatmul.msk.f32.gmra.mxu3 %vm313_vm0, %v266_v1  ;;  %1331 = vmatmul.msk.f32.gmra.mxu0 %vm313_vm0, %v287_v3 }
  0x8f   : > { %1367 = vmatmul.msk.f32.gmra.mxu1 %vm313_vm0, %v248_v4 }
  0x95   : > { %1407 = vmatmul.msk.f32.gmra.mxu2 %vm313_vm0, %v795_v6  ;;  %v810_v6 = vld [vmem:[%s1698_s9 + $0x114] sm:$0xff] }
  0x96   : > { %1386 = vmatmul.msk.f32.gmra.mxu3 %vm313_vm0, %v267_v5  ;;  %1332 = vmatmul.msk.f32.gmra.mxu0 %vm313_vm0, %v288_v7  ;;  %v801_v5 = vld [vmem:[%s1698_s9 + $0xcc] sm:$0xff] }
  0x97   : > { %1368 = vmatmul.msk.f32.gmra.mxu1 %vm313_vm0, %v249_v8 }
  0x9b   : > { %v439_v11 = vpop.f32.mrf.mxu0 }
  0x9c   : > { %v672_v12 = vpop.f32.mrf.mxu1 }
  0x9d   : > { %1408 = vmatmul.msk.f32.gmra.mxu2 %vm313_vm0, %v796_v10  ;;  %v673_v15 = vadd.f32 %v672_v12, %v439_v11  ;;  %v294_v10 = vld [vmem:[%s1698_s9 + $0xba] sm:$0xff]  ;;  %v255_v11 = vld [vmem:[%s1698_s9 + $0xa8] sm:$0xff] }
  0x9e   : > { %1387 = vmatmul.msk.f32.gmra.mxu3 %vm313_vm0, %v268_v9  ;;  %1333 = vmatmul.msk.f32.gmra.mxu0 %vm313_vm0, %v289_v13 }
  0x9f   : > { %1369 = vmatmul.msk.f32.gmra.mxu1 %vm313_vm0, %v250_v14 }
  0xa0   : > { %v945_v17 = vpop.f32.mrf.mxu2 }
  0xa1   : > { %v1837_v16 = vpop.f32.mrf.mxu3  ;;  %v1053_v19 = vadd.f32 %v945_v17, %v673_v15 }
  0xa3   : > { %v1091_v23 = vmul.f32 %v1841_v18, %v1053_v19  ;;  %v442_v24 = vpop.f32.mrf.mxu0  ;;  %v802_v19 = vld [vmem:[%s1698_s9 + $0xd4] sm:$0xff] }
  0xa4   : > { %v675_v25 = vpop.f32.mrf.mxu1 }
  0xa5   : > { %v1131_v28 = vadd.f32 %v1846_v20, %v1091_v23  ;;  %1409 = vmatmul.msk.f32.gmra.mxu2 %vm313_vm0, %v797_v22  ;;  %v676_v29 = vadd.f32 %v675_v25, %v442_v24  ;;  %v295_v25 = vld [vmem:[%s1698_s9 + $0xc2] sm:$0xff] }
  0xa6   : > { %1388 = vmatmul.msk.f32.gmra.mxu3 %vm313_vm0, %v269_v21  ;;  %1334 = vmatmul.msk.f32.gmra.mxu0 %vm313_vm0, %v290_v26  ;;  %v811_v21 = vld [vmem:[%s1698_s9 + $0x11c] sm:$0xff]  ;;  %v256_v26 = vld [vmem:[%s1698_s9 + $0xb0] sm:$0xff] }
  0xa7   : > { %1370 = vmatmul.msk.f32.gmra.mxu1 %vm313_vm0, %v251_v27  ;;  %1167 = vst [vmem:[%s1858_s15] sm:$0xff] %v1131_v28 }
  0xa8   : > { %v948_v31 = vpop.f32.mrf.mxu2 }
  0xa9   : > { %v1861_v30 = vpop.f32.mrf.mxu3  ;;  %v1054_v32 = vadd.f32 %v948_v31, %v676_v29 }
  0xab   : > { %v1092_v35 = vmul.f32 %v1841_v18, %v1054_v32  ;;  %v445_v36 = vpop.f32.mrf.mxu0 }
  0xac   : > { %v678_v37 = vpop.f32.mrf.mxu1 }
  0xad   : > { %v1132_v40 = vadd.f32 %v1846_v20, %v1092_v35  ;;  %1410 = vmatmul.msk.f32.gmra.mxu2 %vm313_vm0, %v798_v33  ;;  %v679_v41 = vadd.f32 %v678_v37, %v445_v36  ;;  %v803_v33 = vld [vmem:[%s1698_s9 + $0xdc] sm:$0xff] }
  0xae   : > { %1419 = vmatmul.msk.f32.vlgmr.msra.gmra.mxu3 %vm313_vm0, %v807_v34  ;;  %1335 = vmatmul.msk.f32.gmra.mxu0 %vm313_vm0, %v291_v38  ;;  %v812_v34 = vld [vmem:[%s1698_s9 + $0x124] sm:$0xff] }
  0xaf   : > { %1371 = vmatmul.msk.f32.gmra.mxu1 %vm313_vm0, %v252_v39  ;;  %1168 = vst [vmem:[%s1858_s15 + $0x8] sm:$0xff] %v1132_v40  ;;  %v296_v38 = vld [vmem:[%s1698_s9 + $0xca] sm:$0xff]  ;;  %v257_v39 = vld [vmem:[%s1698_s9 + $0xb8] sm:$0xff] }
  0xb0   : > { %v951_v43 = vpop.f32.mrf.mxu2 }
  0xb1   : > { %v1874_v42 = vpop.f32.mrf.mxu3  ;;  %v1055_v44 = vadd.f32 %v951_v43, %v679_v41 }
  0xb3   : > { %v1093_v47 = vmul.f32 %v1841_v18, %v1055_v44  ;;  %v448_v48 = vpop.f32.mrf.mxu0 }
  0xb4   : > { %v681_v49 = vpop.f32.mrf.mxu1 }
  0xb5   : > { %v1133_v52 = vadd.f32 %v1846_v20, %v1093_v47  ;;  %1411 = vmatmul.msk.f32.gmra.mxu2 %vm313_vm0, %v799_v45  ;;  %v682_v53 = vadd.f32 %v681_v49, %v448_v48  ;;  %v813_v47 = vld [vmem:[%s1698_s9 + $0x12c] sm:$0xff] }
  0xb6   : > { %1420 = vmatmul.msk.f32.gmra.mxu3 %vm313_vm0, %v808_v46  ;;  %1336 = vmatmul.msk.f32.gmra.mxu0 %vm313_vm0, %v292_v50  ;;  %v804_v46 = vld [vmem:[%s1698_s9 + $0xe4] sm:$0xff] }
  0xb7   : > { %1372 = vmatmul.msk.f32.gmra.mxu1 %vm313_vm0, %v253_v51  ;;  %1169 = vst [vmem:[%s1858_s15 + $0x10] sm:$0xff] %v1133_v52  ;;  %v297_v51 = vld [vmem:[%s1698_s9 + $0xd2] sm:$0xff]  ;;  %v258_v52 = vld [vmem:[%s1698_s9 + $0xc0] sm:$0xff] }
  0xb8   : > { %v954_v55 = vpop.f32.mrf.mxu2 }
  0xb9   : > { %v1887_v54 = vpop.f32.mrf.mxu3  ;;  %v1056_v56 = vadd.f32 %v954_v55, %v682_v53 }
  0xbb   : > { %v1094_v59 = vmul.f32 %v1841_v18, %v1056_v56  ;;  %v451_v60 = vpop.f32.mrf.mxu0 }
  0xbc   : > { %v684_v61 = vpop.f32.mrf.mxu1 }
  0xbd   : > { %v1134_v0 = vadd.f32 %v1846_v20, %v1094_v59  ;;  %1412 = vmatmul.msk.f32.gmra.mxu2 %vm313_vm0, %v800_v57  ;;  %v685_v1 = vadd.f32 %v684_v61, %v451_v60  ;;  %v805_v59 = vld [vmem:[%s1698_s9 + $0xec] sm:$0xff]  ;;  %v814_v60 = vld [vmem:[%s1698_s9 + $0x134] sm:$0xff] }
  0xbe   : > { %1421 = vmatmul.msk.f32.gmra.mxu3 %vm313_vm0, %v809_v58  ;;  %1337 = vmatmul.msk.f32.gmra.mxu0 %vm313_vm0, %v293_v62 }
  0xbf   : > { %1373 = vmatmul.msk.f32.gmra.mxu1 %vm313_vm0, %v254_v63  ;;  %1170 = vst [vmem:[%s1858_s15 + $0x18] sm:$0xff] %v1134_v0  ;;  %v298_v0 = vld [vmem:[%s1698_s9 + $0xda] sm:$0xff] }
  0xc0   : > { %v957_v3 = vpop.f32.mrf.mxu2 }
  0xc1   : > { %v1900_v2 = vpop.f32.mrf.mxu3  ;;  %v1057_v4 = vadd.f32 %v957_v3, %v685_v1  ;;  %v259_v1 = vld [vmem:[%s1698_s9 + $0xc8] sm:$0xff] }
  0xc3   : > { %v1095_v7 = vmul.f32 %v1841_v18, %v1057_v4  ;;  %v454_v8 = vpop.f32.mrf.mxu0 }
  0xc4   : > { %v687_v9 = vpop.f32.mrf.mxu1 }
  0xc5   : > { %v1135_v12 = vadd.f32 %v1846_v20, %v1095_v7  ;;  %1413 = vmatmul.msk.f32.gmra.mxu2 %vm313_vm0, %v801_v5  ;;  %v688_v13 = vadd.f32 %v687_v9, %v454_v8  ;;  %v806_v8 = vld [vmem:[%s1698_s9 + $0xf4] sm:$0xff]  ;;  %v815_v9 = vld [vmem:[%s1698_s9 + $0x13c] sm:$0xff] }
  0xc6   : > { %1422 = vmatmul.msk.f32.gmra.mxu3 %vm313_vm0, %v810_v6  ;;  %1338 = vmatmul.msk.f32.gmra.mxu0 %vm313_vm0, %v294_v10 }
  0xc7   : > { %1374 = vmatmul.msk.f32.gmra.mxu1 %vm313_vm0, %v255_v11  ;;  %1171 = vst [vmem:[%s1858_s15 + $0x20] sm:$0xff] %v1135_v12 }
  0xc8   : > { %v960_v15 = vpop.f32.mrf.mxu2 }
  0xc9   : > { %v1913_v14 = vpop.f32.mrf.mxu3  ;;  %v1058_v17 = vadd.f32 %v960_v15, %v688_v13  ;;  %v299_v13 = vld [vmem:[%s1698_s9 + $0xe2] sm:$0xff]  ;;  %v260_v15 = vld [vmem:[%s1698_s9 + $0xd0] sm:$0xff]  ;;  %s1521_s9 = scalar_lea.hbm %s2133_s4, 576 }
  0xca   : > { %p1523_p2 = scmp.lt.s32.totalorder %s1521_s9, %s1517_s6 }
  0xcb   : > { %v1096_v22 = vmul.f32 %v1841_v18, %v1058_v17  ;;  %v457_v23 = vpop.f32.mrf.mxu0 }
  0xcc   : > { %v690_v24 = vpop.f32.mrf.mxu1  ;;  %p1524_p3 = por %p1523_p2, %p1522_p1 }
  0xcd   : > { %v1136_v27 = vadd.f32 %v1846_v20, %v1096_v22  ;;  %1414 = vmatmul.msk.f32.gmra.mxu2 %vm313_vm0, %v802_v19  ;;  %v691_v28 = vadd.f32 %v690_v24, %v457_v23 }
  0xce   : > { %1423 = vmatmul.msk.f32.gmra.mxu3 %vm313_vm0, %v811_v21  ;;  %1339 = vmatmul.msk.f32.gmra.mxu0 %vm313_vm0, %v295_v25  ;;  %p1525_p5 = pnand %p1524_p3, %p1520_p0 }
  0xcf   : > { %1375 = vmatmul.msk.f32.gmra.mxu1 %vm313_vm0, %v256_v26  ;;  %1172 = vst [vmem:[%s1858_s15 + $0x28] sm:$0xff] %v1136_v27 }
  0xd0   : > { %v963_v31 = vpop.f32.mrf.mxu2 }
  0xd1   : > { %v1926_v29 = vpop.f32.mrf.mxu3  ;;  %v1059_v32 = vadd.f32 %v963_v31, %v691_v28 }
  0xd3   : > { %v1097_v35 = vmul.f32 %v1841_v18, %v1059_v32  ;;  %v460_v36 = vpop.f32.mrf.mxu0 }
  0xd4   : > { %v693_v37 = vpop.f32.mrf.mxu1 }
  0xd5   : > { %v1137_v40 = vadd.f32 %v1846_v20, %v1097_v35  ;;  %1415 = vmatmul.msk.f32.gmra.mxu2 %vm313_vm0, %v803_v33  ;;  %v694_v41 = vadd.f32 %v693_v37, %v460_v36 }
  0xd6   : > { %1424 = vmatmul.msk.f32.gmra.mxu3 %vm313_vm0, %v812_v34  ;;  %1340 = vmatmul.msk.f32.gmra.mxu0 %vm313_vm0, %v296_v38 }
  0xd7   : > { %1376 = vmatmul.msk.f32.gmra.mxu1 %vm313_vm0, %v257_v39  ;;  %1173 = vst [vmem:[%s1858_s15 + $0x30] sm:$0xff] %v1137_v40 }
  0xd8   : > { %v966_v44 = vpop.f32.mrf.mxu2 }
  0xd9   : > { %v1939_v43 = vpop.f32.mrf.mxu3  ;;  %v1060_v45 = vadd.f32 %v966_v44, %v694_v41 }
  0xdb   : > { %v1098_v48 = vmul.f32 %v1841_v18, %v1060_v45  ;;  %v463_v49 = vpop.f32.mrf.mxu0 }
  0xdc   : > { %v696_v50 = vpop.f32.mrf.mxu1 }
  0xdd   : > { %v1138_v53 = vadd.f32 %v1846_v20, %v1098_v48  ;;  %1416 = vmatmul.msk.f32.gmra.mxu2 %vm313_vm0, %v804_v46  ;;  %v697_v55 = vadd.f32 %v696_v50, %v463_v49 }
  0xde   : > { %1425 = vmatmul.msk.f32.gmra.mxu3 %vm313_vm0, %v813_v47  ;;  %1341 = vmatmul.msk.f32.gmra.mxu0 %vm313_vm0, %v297_v51 }
  0xdf   : > { %1377 = vmatmul.msk.f32.gmra.mxu1 %vm313_vm0, %v258_v52  ;;  %1174 = vst [vmem:[%s1858_s15 + $0x38] sm:$0xff] %v1138_v53 }
  0xe0   : > { %v969_v57 = vpop.f32.mrf.mxu2 }
  0xe1   : > { %v1952_v56 = vpop.f32.mrf.mxu3  ;;  %v1061_v58 = vadd.f32 %v969_v57, %v697_v55 }
  0xe3   : > { %v1099_v61 = vmul.f32 %v1841_v18, %v1061_v58  ;;  %v466_v62 = vpop.f32.mrf.mxu0 }
  0xe4   : > { %v699_v63 = vpop.f32.mrf.mxu1 }
  0xe5   : > { %v1139_v3 = vadd.f32 %v1846_v20, %v1099_v61  ;;  %1417 = vmatmul.msk.f32.gmra.mxu2 %vm313_vm0, %v805_v59  ;;  %v700_v4 = vadd.f32 %v699_v63, %v466_v62 }
  0xe6   : > { %1426 = vmatmul.msk.f32.gmra.mxu3 %vm313_vm0, %v814_v60  ;;  %1342 = vmatmul.msk.f32.gmra.mxu0 %vm313_vm0, %v298_v0 }
  0xe7   : > { %1378 = vmatmul.msk.f32.gmra.mxu1 %vm313_vm0, %v259_v1  ;;  %1175 = vst [vmem:[%s1858_s15 + $0x40] sm:$0xff] %v1139_v3 }
  0xe8   : > { %v972_v6 = vpop.f32.mrf.mxu2 }
  0xe9   : > { %v1965_v5 = vpop.f32.mrf.mxu3  ;;  %v1062_v7 = vadd.f32 %v972_v6, %v700_v4 }
  0xeb   : > { %v1100_v10 = vmul.f32 %v1841_v18, %v1062_v7  ;;  %v469_v11 = vpop.f32.mrf.mxu0 }
  0xec   : > { %v702_v12 = vpop.f32.mrf.mxu1 }
  0xed   : > { %v1140_v17 = vadd.f32 %v1846_v20, %v1100_v10  ;;  %1418 = vmatmul.msk.f32.gmra.mxu2 %vm313_vm0, %v806_v8  ;;  %v703_v19 = vadd.f32 %v702_v12, %v469_v11 }
  0xee   : > { %1427 = vmatmul.msk.f32.gmra.mxu3 %vm313_vm0, %v815_v9  ;;  %1343 = vmatmul.msk.f32.gmra.mxu0 %vm313_vm0, %v299_v13 }
  0xef   : > { %1379 = vmatmul.msk.f32.gmra.mxu1 %vm313_vm0, %v260_v15  ;;  %1176 = vst [vmem:[%s1858_s15 + $0x48] sm:$0xff] %v1140_v17 }
  0xf0   : > { %v975_v22 = vpop.f32.mrf.mxu2 }
  0xf1   : > { %v1978_v21 = vpop.f32.mrf.mxu3  ;;  %v1063_v23 = vadd.f32 %v975_v22, %v703_v19 }
  0xf3   : > { %v1101_v24 = vmul.f32 %v1841_v18, %v1063_v23  ;;  %v472_v25 = vpop.f32.mrf.mxu0 }
  0xf4   : > { %v705_v26 = vpop.f32.mrf.mxu1 }
  0xf5   : > { %v1141_v27 = vadd.f32 %v1846_v20, %v1101_v24  ;;  %v706_v28 = vadd.f32 %v705_v26, %v472_v25 }
  0xf7   : > { %1177 = vst [vmem:[%s1858_s15 + $0x50] sm:$0xff] %v1141_v27 }
  0xf8   : > { %v978_v32 = vpop.f32.mrf.mxu2 }
  0xf9   : > { %v1983_v31 = vpop.f32.mrf.mxu3  ;;  %v1064_v33 = vadd.f32 %v978_v32, %v706_v28 }
  0xfb   : > { %v1102_v34 = vmul.f32 %v1841_v18, %v1064_v33  ;;  %v475_v35 = vpop.f32.mrf.mxu0 }
  0xfc   : > { %v708_v36 = vpop.f32.mrf.mxu1 }
  0xfd   : > { %v1142_v37 = vadd.f32 %v1846_v20, %v1102_v34  ;;  %v709_v38 = vadd.f32 %v708_v36, %v475_v35 }
  0xff   : > { %1178 = vst [vmem:[%s1858_s15 + $0x58] sm:$0xff] %v1142_v37  ;;  %v754_v37 = vadd.f32 %v1965_v5, %v1837_v16  ;;  %v757_v16 = vadd.f32 %v1978_v21, %v1861_v30  ;;  %v760_v30 = vadd.f32 %v1983_v31, %v1874_v42 }
 0x100   : > { %v981_v40 = vpop.f32.mrf.mxu2 }
 0x101   : > { %v1988_v39 = vpop.f32.mrf.mxu3  ;;  %v1065_v41 = vadd.f32 %v981_v40, %v709_v38 }
 0x102   : > { %v763_v42 = vadd.f32 %v1988_v39, %v1887_v54 }
 0x103   : > { %v1103_v44 = vmul.f32 %v1841_v18, %v1065_v41  ;;  %v478_v45 = vpop.f32.mrf.mxu0 }
 0x104   : > { %v711_v46 = vpop.f32.mrf.mxu1 }
 0x105   : > { %v1143_v47 = vadd.f32 %v1846_v20, %v1103_v44  ;;  %v712_v48 = vadd.f32 %v711_v46, %v478_v45 }
 0x107   : > { %1179 = vst [vmem:[%s1858_s15 + $0x60] sm:$0xff] %v1143_v47 }
 0x108   : > { %v984_v50 = vpop.f32.mrf.mxu2 }
 0x109   : > { %v1993_v49 = vpop.f32.mrf.mxu3  ;;  %v1066_v51 = vadd.f32 %v984_v50, %v712_v48 }
 0x10a   : > { %v766_v54 = vadd.f32 %v1993_v49, %v1900_v2 }
 0x10b   : > { %v1104_v52 = vmul.f32 %v1841_v18, %v1066_v51  ;;  %v481_v53 = vpop.f32.mrf.mxu0 }
 0x10c   : > { %v714_v55 = vpop.f32.mrf.mxu1 }
 0x10d   : > { %v1144_v57 = vadd.f32 %v1846_v20, %v1104_v52  ;;  %v715_v58 = vadd.f32 %v714_v55, %v481_v53 }
 0x10f   : > { %1180 = vst [vmem:[%s1858_s15 + $0x68] sm:$0xff] %v1144_v57 }
 0x110   : > { %v987_v60 = vpop.f32.mrf.mxu2 }
 0x111   : > { %v1998_v59 = vpop.f32.mrf.mxu3  ;;  %v1067_v61 = vadd.f32 %v987_v60, %v715_v58 }
 0x112   : > { %v769_v2 = vadd.f32 %v1998_v59, %v1913_v14 }
 0x113   : > { %v1105_v62 = vmul.f32 %v1841_v18, %v1067_v61  ;;  %v484_v63 = vpop.f32.mrf.mxu0 }
 0x114   : > { %v717_v0 = vpop.f32.mrf.mxu1 }
 0x115   : > { %v1145_v1 = vadd.f32 %v1846_v20, %v1105_v62  ;;  %v718_v3 = vadd.f32 %v717_v0, %v484_v63 }
 0x117   : > { %1181 = vst [vmem:[%s1858_s15 + $0x70] sm:$0xff] %v1145_v1 }
 0x118   : > { %v990_v6 = vpop.f32.mrf.mxu2 }
 0x119   : > { %v2003_v4 = vpop.f32.mrf.mxu3  ;;  %v1068_v7 = vadd.f32 %v990_v6, %v718_v3 }
 0x11a   : > { %v772_v14 = vadd.f32 %v2003_v4, %v1926_v29 }
 0x11b   : > { %v1106_v8 = vmul.f32 %v1841_v18, %v1068_v7  ;;  %v487_v9 = vpop.f32.mrf.mxu0 }
 0x11c   : > { %v720_v10 = vpop.f32.mrf.mxu1 }
 0x11d   : > { %v1146_v11 = vadd.f32 %v1846_v20, %v1106_v8  ;;  %v721_v12 = vadd.f32 %v720_v10, %v487_v9 }
 0x11f   : > { %1182 = vst [vmem:[%s1858_s15 + $0x78] sm:$0xff] %v1146_v11 }
 0x120   : > { %v993_v15 = vpop.f32.mrf.mxu2 }
 0x121   : > { %v2008_v13 = vpop.f32.mrf.mxu3  ;;  %v1069_v17 = vadd.f32 %v993_v15, %v721_v12 }
 0x122   : > { %v775_v29 = vadd.f32 %v2008_v13, %v1939_v43 }
 0x123   : > { %v1107_v19 = vmul.f32 %v1841_v18, %v1069_v17  ;;  %v490_v22 = vpop.f32.mrf.mxu0 }
 0x124   : > { %v723_v23 = vpop.f32.mrf.mxu1 }
 0x125   : > { %v1147_v24 = vadd.f32 %v1846_v20, %v1107_v19  ;;  %v724_v25 = vadd.f32 %v723_v23, %v490_v22 }
 0x127   : > { %1183 = vst [vmem:[%s1858_s15 + $0x80] sm:$0xff] %v1147_v24 }
 0x128   : > { %v996_v27 = vpop.f32.mrf.mxu2 }
 0x129   : > { %v2013_v26 = vpop.f32.mrf.mxu3  ;;  %v1070_v28 = vadd.f32 %v996_v27, %v724_v25 }
 0x12b   : > { %v1108_v32 = vmul.f32 %v1841_v18, %v1070_v28  ;;  %v493_v33 = vpop.f32.mrf.mxu0 }
 0x12c   : > { %v726_v34 = vpop.f32.mrf.mxu1 }
 0x12d   : > { %v1148_v35 = vadd.f32 %v1846_v20, %v1108_v32  ;;  %v727_v36 = vadd.f32 %v726_v34, %v493_v33 }
 0x12f   : > { %1184 = vst [vmem:[%s1858_s15 + $0x88] sm:$0xff] %v1148_v35 }
 0x130   : > { %v999_v38 = vpop.f32.mrf.mxu2 }
 0x131   : > { %v1026_v40 = vpop.f32.mrf.mxu3  ;;  %v1071_v41 = vadd.f32 %v999_v38, %v727_v36 }
 0x132   : > { %v1080_v44 = vadd.f32 %v1026_v40, %v754_v37 }
 0x133   : > { %v1109_v45 = vmul.f32 %v1841_v18, %v1071_v41  ;;  %v496_v47 = vpop.f32.mrf.mxu0 }
 0x134   : > { %v1118_v46 = vmul.f32 %v1841_v18, %v1080_v44  ;;  %v729_v48 = vpop.f32.mrf.mxu1 }
 0x135   : > { %v1149_v50 = vadd.f32 %v1846_v20, %v1109_v45  ;;  %v730_v52 = vadd.f32 %v729_v48, %v496_v47 }
 0x136   : > { %v1158_v51 = vadd.f32 %v1846_v20, %v1118_v46 }
 0x137   : > { %1185 = vst [vmem:[%s1858_s15 + $0x90] sm:$0xff] %v1149_v50 }
 0x138   : > { %1194 = vst [vmem:[%s1858_s15 + $0xd8] sm:$0xff] %v1158_v51  ;;  %v1002_v5 = vpop.f32.mrf.mxu2 }
 0x139   : > { %v1029_v53 = vpop.f32.mrf.mxu3  ;;  %v1072_v55 = vadd.f32 %v1002_v5, %v730_v52 }
 0x13a   : > { %v1081_v57 = vadd.f32 %v1029_v53, %v757_v16 }
 0x13b   : > { %v1110_v58 = vmul.f32 %v1841_v18, %v1072_v55  ;;  %v499_v61 = vpop.f32.mrf.mxu0 }
 0x13c   : > { %v1119_v60 = vmul.f32 %v1841_v18, %v1081_v57  ;;  %v732_v62 = vpop.f32.mrf.mxu1 }
 0x13d   : > { %v1150_v63 = vadd.f32 %v1846_v20, %v1110_v58  ;;  %v733_v1 = vadd.f32 %v732_v62, %v499_v61 }
 0x13e   : > { %v1159_v0 = vadd.f32 %v1846_v20, %v1119_v60 }
 0x13f   : > { %1186 = vst [vmem:[%s1858_s15 + $0x98] sm:$0xff] %v1150_v63 }
 0x140   : > { %1195 = vst [vmem:[%s1858_s15 + $0xe0] sm:$0xff] %v1159_v0  ;;  %v1005_v21 = vpop.f32.mrf.mxu2 }
 0x141   : > { %v1032_v3 = vpop.f32.mrf.mxu3  ;;  %v1073_v6 = vadd.f32 %v1005_v21, %v733_v1 }
 0x142   : > { %v1082_v7 = vadd.f32 %v1032_v3, %v760_v30 }
 0x143   : > { %v1111_v8 = vmul.f32 %v1841_v18, %v1073_v6  ;;  %v502_v10 = vpop.f32.mrf.mxu0 }
 0x144   : > { %v1120_v9 = vmul.f32 %v1841_v18, %v1082_v7  ;;  %v735_v11 = vpop.f32.mrf.mxu1 }
 0x145   : > { %v1151_v12 = vadd.f32 %v1846_v20, %v1111_v8  ;;  %v736_v17 = vadd.f32 %v735_v11, %v502_v10 }
 0x146   : > { %v1160_v15 = vadd.f32 %v1846_v20, %v1120_v9 }
 0x147   : > { %1187 = vst [vmem:[%s1858_s15 + $0xa0] sm:$0xff] %v1151_v12 }
 0x148   : > { %1196 = vst [vmem:[%s1858_s15 + $0xe8] sm:$0xff] %v1160_v15  ;;  %v1008_v31 = vpop.f32.mrf.mxu2 }
 0x149   : > { %v1035_v19 = vpop.f32.mrf.mxu3  ;;  %v1074_v22 = vadd.f32 %v1008_v31, %v736_v17 }
 0x14a   : > { %v1083_v23 = vadd.f32 %v1035_v19, %v763_v42  ;;  %v778_v42 = vadd.f32 %v2013_v26, %v1952_v56 }
 0x14b   : > { %v1112_v24 = vmul.f32 %v1841_v18, %v1074_v22  ;;  %v505_v27 = vpop.f32.mrf.mxu0 }
 0x14c   : > { %v1121_v25 = vmul.f32 %v1841_v18, %v1083_v23  ;;  %v738_v28 = vpop.f32.mrf.mxu1 }
 0x14d   : > { %v1152_v32 = vadd.f32 %v1846_v20, %v1112_v24  ;;  %v739_v34 = vadd.f32 %v738_v28, %v505_v27 }
 0x14e   : > { %v1161_v33 = vadd.f32 %v1846_v20, %v1121_v25 }
 0x14f   : > { %1188 = vst [vmem:[%s1858_s15 + $0xa8] sm:$0xff] %v1152_v32 }
 0x150   : > { %1197 = vst [vmem:[%s1858_s15 + $0xf0] sm:$0xff] %v1161_v33  ;;  %v1011_v39 = vpop.f32.mrf.mxu2 }
 0x151   : > { %v1038_v35 = vpop.f32.mrf.mxu3  ;;  %v1075_v36 = vadd.f32 %v1011_v39, %v739_v34 }
 0x152   : > { %v1084_v37 = vadd.f32 %v1038_v35, %v766_v54 }
 0x153   : > { %v1113_v38 = vmul.f32 %v1841_v18, %v1075_v36  ;;  %v508_v41 = vpop.f32.mrf.mxu0 }
 0x154   : > { %v1122_v40 = vmul.f32 %v1841_v18, %v1084_v37  ;;  %v741_v44 = vpop.f32.mrf.mxu1 }
 0x155   : > { %v1153_v45 = vadd.f32 %v1846_v20, %v1113_v38  ;;  %v742_v47 = vadd.f32 %v741_v44, %v508_v41 }
 0x156   : > { %v1162_v46 = vadd.f32 %v1846_v20, %v1122_v40 }
 0x157   : > { %1189 = vst [vmem:[%s1858_s15 + $0xb0] sm:$0xff] %v1153_v45 }
 0x158   : > { %1198 = vst [vmem:[%s1858_s15 + $0xf8] sm:$0xff] %v1162_v46  ;;  %v1014_v49 = vpop.f32.mrf.mxu2 }
 0x159   : > { %v1041_v48 = vpop.f32.mrf.mxu3  ;;  %v1076_v50 = vadd.f32 %v1014_v49, %v742_v47 }
 0x15a   : > { %v1085_v51 = vadd.f32 %v1041_v48, %v769_v2 }
 0x15b   : > { %v1114_v52 = vmul.f32 %v1841_v18, %v1076_v50  ;;  %v511_v5 = vpop.f32.mrf.mxu0 }
 0x15c   : > { %v1123_v16 = vmul.f32 %v1841_v18, %v1085_v51  ;;  %v744_v53 = vpop.f32.mrf.mxu1 }
 0x15d   : > { %v1154_v55 = vadd.f32 %v1846_v20, %v1114_v52  ;;  %v745_v58 = vadd.f32 %v744_v53, %v511_v5 }
 0x15e   : > { %v1163_v57 = vadd.f32 %v1846_v20, %v1123_v16 }
 0x15f   : > { %1190 = vst [vmem:[%s1858_s15 + $0xb8] sm:$0xff] %v1154_v55 }
 0x160   : > { %1199 = vst [vmem:[%s1858_s15 + $0x100] sm:$0xff] %v1163_v57  ;;  %v1017_v59 = vpop.f32.mrf.mxu2 }
 0x161   : > { %v1044_v60 = vpop.f32.mrf.mxu3  ;;  %v1077_v61 = vadd.f32 %v1017_v59, %v745_v58 }
 0x162   : > { %v1086_v62 = vadd.f32 %v1044_v60, %v772_v14 }
 0x163   : > { %v1115_v63 = vmul.f32 %v1841_v18, %v1077_v61  ;;  %v514_v1 = vpop.f32.mrf.mxu0 }
 0x164   : > { %v1124_v0 = vmul.f32 %v1841_v18, %v1086_v62  ;;  %v747_v30 = vpop.f32.mrf.mxu1 }
 0x165   : > { %v1155_v21 = vadd.f32 %v1846_v20, %v1115_v63  ;;  %v748_v6 = vadd.f32 %v747_v30, %v514_v1 }
 0x166   : > { %v1164_v3 = vadd.f32 %v1846_v20, %v1124_v0 }
 0x167   : > { %1191 = vst [vmem:[%s1858_s15 + $0xc0] sm:$0xff] %v1155_v21 }
 0x168   : > { %1200 = vst [vmem:[%s1858_s15 + $0x108] sm:$0xff] %v1164_v3  ;;  %v1020_v4 = vpop.f32.mrf.mxu2 }
 0x169   : > { %v1047_v7 = vpop.f32.mrf.mxu3  ;;  %v1078_v8 = vadd.f32 %v1020_v4, %v748_v6 }
 0x16a   : > { %v1087_v9 = vadd.f32 %v1047_v7, %v775_v29 }
 0x16b   : > { %v1116_v10 = vmul.f32 %v1841_v18, %v1078_v8  ;;  %v517_v12 = vpop.f32.mrf.mxu0 }
 0x16c   : > { %v1125_v11 = vmul.f32 %v1841_v18, %v1087_v9  ;;  %v750_v15 = vpop.f32.mrf.mxu1 }
 0x16d   : > { %v1156_v17 = vadd.f32 %v1846_v20, %v1116_v10  ;;  %v751_v13 = vadd.f32 %v750_v15, %v517_v12 }
 0x16e   : > { %v1165_v43 = vadd.f32 %v1846_v20, %v1125_v11 }
 0x16f   : > { %1192 = vst [vmem:[%s1858_s15 + $0xc8] sm:$0xff] %v1156_v17 }
 0x170   : > { %1201 = vst [vmem:[%s1858_s15 + $0x110] sm:$0xff] %v1165_v43  ;;  %v1023_v31 = vpop.f32.mrf.mxu2 }
 0x171   : > { %v1050_v19 = vpop.f32.mrf.mxu3  ;;  %v1079_v22 = vadd.f32 %v1023_v31, %v751_v13 }
 0x172   : > { %v1088_v23 = vadd.f32 %v1050_v19, %v778_v42 }
 0x173   : > { %v1117_v24 = vmul.f32 %v1841_v18, %v1079_v22 }
 0x174   : > { %v1126_v56 = vmul.f32 %v1841_v18, %v1088_v23 }
 0x175   : > { %v1157_v26 = vadd.f32 %v1846_v20, %v1117_v24 }
 0x176   : > { %v1166_v25 = vadd.f32 %v1846_v20, %v1126_v56 }
 0x177   : > { %1193 = vst [vmem:[%s1858_s15 + $0xd0] sm:$0xff] %v1157_v26 }
 0x178   : > { %1202 = vst [vmem:[%s1858_s15 + $0x118] sm:$0xff] %v1166_v25 }
 0x179   : > { %1528 = shalt.err (!%p1525_p5)
}
 0x17a   : > { %s1581_s11 = smov 128   ;;  %s1582_s13 = smov 8  }
 0x17b   : > { %1443 = dma.vmem_to_hbm [thread:$0]  (%p1651_p4), %s1220_s20, 4608, %s1222_s27, %s1204_s30, %s1581_s11, %s1581_s11, %s1582_s13  }
 0x17c PF: > { %p1449_p6 = scmp.ge.s32.totalorder %s1579_s22, 2  ;;  %s1236_s14 = sand.u32 1, %s1559_s17  }
 0x17d   : > { %s1237_s15 = scalar_lea.sflag [#allocation4], %s1236_s14 }
 0x17e   : > { %p1446_p7 = pnand %p1449_p6, %p1658_p8 }
 0x180   : > { %p1447_p9 = pneg %p1446_p7 }
 0x182   : > { %1554 = dma.done.wait (%p1447_p9), %s1237_s15, 4608  }
 0x183   : > { %1556 = vsyncadd (%p1447_p9), %s1237_s15, 4294962688  ;;  %s18_s22 = sadd.s32 1, %s1579_s22   ;;  %s2136_s17 = smov %s1563_s18 }
 0x184   : > { %p15_p10 = scmp.ge.s32.totalorder %s18_s22, 4   ;;  %s2137_s18 = smov %s1567_s19 }
 0x185   : > { %s2138_s19 = smov %s1664_s29  ;;  %s2139_s20 = smov %s1575_s21 }
 0x186   : > { %s2140_s21 = smov %s2142_s24  ;;  %17 = sbr.rel (!%p15_p10) target bundleno = 6 (0x6), region = 73 }
 0x18b   :  { %1243 = vsyncpa [#allocation4], 1 }
 0x18c   :  { %1245 = vsyncpa [#allocation4 + $0x1], 1 }

</bundles_post_ra>
